<compile_context>
chip_gen: v7x
topology: tpu7x:2x2x1
jax: 0.10.0
libtpu: 0.0.40
codegen_flags: <defaults>
</compile_context>

<pallas_src>
import jax
import jax.numpy as jnp
from jax.experimental import pallas as pl
from jax.experimental.pallas import tpu as pltpu


def _cca_kernel(x_ref, w1_ref, b1_ref, w2_ref, b2_ref, o_ref):
    # x_ref : (Bt, C, HW)  feature-map slab, spatial on the lane axis
    # w1_ref: (1, C, Cr)   conv_du[0] weight, transposed (w1[j, c] -> [c, j])
    # b1_ref: (1, 1, Cr)
    # w2_ref: (1, C, Cr)   conv_du[2] weight (w2[c, j])
    # b2_ref: (1, C, 1)
    x = x_ref[...]                                   # input dtype
    xf = x.astype(jnp.float32)                       # f32 accumulation for stats
    inv_n = 1.0 / x.shape[-1]

    # contrast (biased std over spatial) + global average pool — one pass:
    mean = jnp.sum(xf, axis=-1, keepdims=True) * inv_n            # (Bt, C, 1)
    sumsq = jnp.sum(xf * xf, axis=-1, keepdims=True) * inv_n      # (Bt, C, 1)
    var = jnp.maximum(sumsq - mean * mean, 0.0)                   # clamp cancellation
    s = jnp.sqrt(var) + mean                                      # (Bt, C, 1)

    # conv_du: 1x1 conv -> ReLU -> 1x1 conv -> sigmoid, batched over Bt.
    w1 = w1_ref[...].astype(jnp.float32)                          # (1, C, Cr)
    b1 = b1_ref[...].astype(jnp.float32)                          # (1, 1, Cr)
    w2 = w2_ref[...].astype(jnp.float32)                          # (1, C, Cr)
    b2 = b2_ref[...].astype(jnp.float32)                          # (1, C, 1)

    h = jnp.sum(s * w1, axis=1, keepdims=True) + b1               # (Bt, 1, Cr)
    h = jnp.maximum(h, 0.0)
    g = jnp.sum(h * w2, axis=-1, keepdims=True) + b2              # (Bt, C, 1)
    gate = jax.nn.sigmoid(g)

    # channel-wise gating; store at the input width (lane-dense for HW % 128 == 0)
    o_ref[...] = x * gate.astype(x.dtype)


def _vmem_budget_bytes():
    """Generation-aware VMEM budget: ~75% of physical, safe fallback 48 MiB."""
    cap = None
    try:
        cap = getattr(pltpu.get_tpu_info(), "vmem_capacity_bytes", None)
    except Exception:
        cap = None
    if not cap:
        cap = 64 * 1024 * 1024          # v7x physical (smallest across v5e/v6e/v7x)
    return max(16 * 1024 * 1024, int(cap * 3 // 4))


def cca_layer(x, w1, b1, w2, b2):
    """x: (B, C, H, W); w1: (C//r, C); b1: (C//r,); w2: (C, C//r); b2: (C,)."""
    B, C, H, W = x.shape
    HW = H * W
    Cr = w1.shape[0]
    assert w1.shape == (Cr, C) and w2.shape == (C, Cr)
    assert b1.shape == (Cr,) and b2.shape == (C,)

    x3 = x.reshape(B, C, HW)
    w1b = jnp.transpose(w1).reshape(1, C, Cr)   # [c, j] layout for sublane reduce
    b1b = b1.reshape(1, 1, Cr)
    w2b = w2.reshape(1, C, Cr)
    b2b = b2.reshape(1, C, 1)

    itemsize = jnp.dtype(x.dtype).itemsize
    per_batch = C * HW * itemsize
    weight_bytes = (2 * C * Cr + Cr + C) * 4
    budget = _vmem_budget_bytes()

    def step_bytes(bt):
        # in + out slabs, double-buffered, plus weights and headroom
        return 4 * bt * per_batch + 4 * weight_bytes + (1 << 20)

    # Largest Bt dividing B whose slab fits the VMEM budget.
    Bt = 1
    for cand in range(B, 0, -1):
        if B % cand == 0 and step_bytes(cand) <= budget:
            Bt = cand
            break
    # Keep >= 2 grid steps when per-step work is big enough that overlapping
    # DMA with compute (and feeding both v7x TensorCores) matters.
    if B // Bt < 2 and B >= 2 and Bt % 2 == 0 and Bt * per_batch >= (4 << 20):
        Bt //= 2

    vmem_limit = int(min(budget, max(32 * 1024 * 1024, step_bytes(Bt))))
    grid = (B // Bt,)

    out3 = pl.pallas_call(
        _cca_kernel,
        out_shape=jax.ShapeDtypeStruct((B, C, HW), x.dtype),
        grid_spec=pltpu.PrefetchScalarGridSpec(
            num_scalar_prefetch=0,
            grid=grid,
            in_specs=[
                pl.BlockSpec((Bt, C, HW), lambda b: (b, 0, 0)),   # feature slab
                # Weights/biases are grid-invariant (constant index_map -> no
                # re-DMA per step); double-buffering them costs only a few KiB.
                pl.BlockSpec((1, C, Cr), lambda b: (0, 0, 0)),    # conv1 weight^T
                pl.BlockSpec((1, 1, Cr), lambda b: (0, 0, 0)),    # conv1 bias
                pl.BlockSpec((1, C, Cr), lambda b: (0, 0, 0)),    # conv2 weight
                pl.BlockSpec((1, C, 1), lambda b: (0, 0, 0)),     # conv2 bias
            ],
            out_specs=pl.BlockSpec((Bt, C, HW), lambda b: (b, 0, 0)),
        ),
        compiler_params=pltpu.CompilerParams(
            dimension_semantics=("parallel",),   # batch blocks shard across TCs
            vmem_limit_bytes=vmem_limit,
        ),
    )(x3, w1b, b1b, w2b, b2b)

    return out3.reshape(B, C, H, W)


def _reference(x, w1, b1, w2, b2):
    # Matches the PyTorch module: stdv_channels uses the *biased* variance (/N).
    mean = jnp.mean(x, axis=(2, 3), keepdims=True)
    var = jnp.mean((x - mean) ** 2, axis=(2, 3), keepdims=True)
    s = (jnp.sqrt(var) + mean).reshape(x.shape[0], x.shape[1])   # contrast + avg_pool
    h = jnp.maximum(s @ w1.T + b1, 0.0)
    g = jax.nn.sigmoid(h @ w2.T + b2)                            # (B, C)
    return x * g[:, :, None, None]


if __name__ == "__main__":
    key = jax.random.PRNGKey(0)
    k_x, k_w1, k_b1, k_w2, k_b2 = jax.random.split(key, 5)

    # Small shapes consistent with the module: channel=64, reduction=16 -> Cr=4.
    B, C, H, W = 2, 64, 16, 16
    reduction = 16
    Cr = C // reduction

    x = jax.random.normal(k_x, (B, C, H, W), dtype=jnp.float32)
    w1 = 0.1 * jax.random.normal(k_w1, (Cr, C), dtype=jnp.float32)
    b1 = 0.1 * jax.random.normal(k_b1, (Cr,), dtype=jnp.float32)
    w2 = 0.1 * jax.random.normal(k_w2, (C, Cr), dtype=jnp.float32)
    b2 = 0.1 * jax.random.normal(k_b2, (C,), dtype=jnp.float32)

    out = cca_layer(x, w1, b1, w2, b2)
    out = jax.block_until_ready(out)

    ref = _reference(x, w1, b1, w2, b2)
    assert out.shape == x.shape
    assert jnp.allclose(out, ref, atol=2e-5, rtol=2e-5), "mismatch vs reference"

    print("KERNEL_OK")
</pallas_src>

<mosaic_0001>
module attributes {stable_mosaic.version = 11 : i64} {
  func.func @_cca_kernel(%arg0: i32, %arg1: memref<2x64x256xf32, #tpu.memory_space<vmem>>, %arg2: memref<1x64x4xf32, #tpu.memory_space<vmem>>, %arg3: memref<1x1x4xf32, #tpu.memory_space<vmem>>, %arg4: memref<1x64x4xf32, #tpu.memory_space<vmem>>, %arg5: memref<1x64x1xf32, #tpu.memory_space<vmem>>, %arg6: memref<2x64x256xf32, #tpu.memory_space<vmem>>) attributes {dimension_semantics = [#tpu.dimension_semantics<parallel>], iteration_bounds = array<i64: 1>, scalar_prefetch = 0 : i64, scratch_operands = 0 : i64, tpu.core_type = #tpu.core_type<tc>, window_params = [{transform_indices = @transform_0, window_bounds = array<i64: 2, 64, 256>}, {pipeline_mode = #tpu.pipeline_mode<synchronous>, transform_indices = @transform_1, window_bounds = array<i64: 1, 64, 4>}, {pipeline_mode = #tpu.pipeline_mode<synchronous>, transform_indices = @transform_2, window_bounds = array<i64: 1, 1, 4>}, {pipeline_mode = #tpu.pipeline_mode<synchronous>, transform_indices = @transform_3, window_bounds = array<i64: 1, 64, 4>}, {pipeline_mode = #tpu.pipeline_mode<synchronous>, transform_indices = @transform_4, window_bounds = array<i64: 1, 64, 1>}, {transform_indices = @transform_5, window_bounds = array<i64: 2, 64, 256>}]} {
    %c0 = arith.constant 0 : index
    %c0_0 = arith.constant 0 : index
    %c0_1 = arith.constant 0 : index
    %0 = vector.load %arg1[%c0, %c0_0, %c0_1] : memref<2x64x256xf32, #tpu.memory_space<vmem>>, vector<2x64x256xf32>
    %cst = arith.constant dense<0.000000e+00> : vector<2x64xf32>
    %1 = vector.multi_reduction <add>, %0, %cst [2] : vector<2x64x256xf32> to vector<2x64xf32>
    %2 = vector.shape_cast %1 : vector<2x64xf32> to vector<2x64x1xf32>
    %cst_2 = arith.constant 3.906250e-03 : f32
    %3 = vector.broadcast %cst_2 : f32 to vector<2x64x1xf32>
    %4 = arith.mulf %2, %3 : vector<2x64x1xf32>
    %5 = arith.mulf %0, %0 : vector<2x64x256xf32>
    %cst_3 = arith.constant dense<0.000000e+00> : vector<2x64xf32>
    %6 = vector.multi_reduction <add>, %5, %cst_3 [2] : vector<2x64x256xf32> to vector<2x64xf32>
    %7 = vector.shape_cast %6 : vector<2x64xf32> to vector<2x64x1xf32>
    %cst_4 = arith.constant 3.906250e-03 : f32
    %8 = vector.broadcast %cst_4 : f32 to vector<2x64x1xf32>
    %9 = arith.mulf %7, %8 : vector<2x64x1xf32>
    %10 = arith.mulf %4, %4 : vector<2x64x1xf32>
    %11 = arith.subf %9, %10 : vector<2x64x1xf32>
    %cst_5 = arith.constant 0.000000e+00 : f32
    %12 = vector.broadcast %cst_5 : f32 to vector<2x64x1xf32>
    %13 = arith.maximumf %11, %12 : vector<2x64x1xf32>
    %14 = math.sqrt %13 : vector<2x64x1xf32>
    %15 = arith.addf %14, %4 : vector<2x64x1xf32>
    %c0_6 = arith.constant 0 : index
    %c0_7 = arith.constant 0 : index
    %c0_8 = arith.constant 0 : index
    %16 = vector.load %arg2[%c0_6, %c0_7, %c0_8] : memref<1x64x4xf32, #tpu.memory_space<vmem>>, vector<1x64x4xf32>
    %c0_9 = arith.constant 0 : index
    %c0_10 = arith.constant 0 : index
    %c0_11 = arith.constant 0 : index
    %17 = vector.load %arg3[%c0_9, %c0_10, %c0_11] : memref<1x1x4xf32, #tpu.memory_space<vmem>>, vector<1x1x4xf32>
    %c0_12 = arith.constant 0 : index
    %c0_13 = arith.constant 0 : index
    %c0_14 = arith.constant 0 : index
    %18 = vector.load %arg4[%c0_12, %c0_13, %c0_14] : memref<1x64x4xf32, #tpu.memory_space<vmem>>, vector<1x64x4xf32>
    %c0_15 = arith.constant 0 : index
    %c0_16 = arith.constant 0 : index
    %c0_17 = arith.constant 0 : index
    %19 = vector.load %arg5[%c0_15, %c0_16, %c0_17] : memref<1x64x1xf32, #tpu.memory_space<vmem>>, vector<1x64x1xf32>
    %20 = vector.broadcast %15 : vector<2x64x1xf32> to vector<2x64x4xf32>
    %21 = vector.broadcast %16 : vector<1x64x4xf32> to vector<2x64x4xf32>
    %22 = arith.mulf %20, %21 : vector<2x64x4xf32>
    %cst_18 = arith.constant dense<0.000000e+00> : vector<2x4xf32>
    %23 = vector.multi_reduction <add>, %22, %cst_18 [1] : vector<2x64x4xf32> to vector<2x4xf32>
    %24 = vector.shape_cast %23 : vector<2x4xf32> to vector<2x1x4xf32>
    %25 = vector.broadcast %17 : vector<1x1x4xf32> to vector<2x1x4xf32>
    %26 = arith.addf %24, %25 : vector<2x1x4xf32>
    %cst_19 = arith.constant 0.000000e+00 : f32
    %27 = vector.broadcast %cst_19 : f32 to vector<2x1x4xf32>
    %28 = arith.maximumf %26, %27 : vector<2x1x4xf32>
    %29 = vector.broadcast %28 : vector<2x1x4xf32> to vector<2x64x4xf32>
    %30 = vector.broadcast %18 : vector<1x64x4xf32> to vector<2x64x4xf32>
    %31 = arith.mulf %29, %30 : vector<2x64x4xf32>
    %cst_20 = arith.constant dense<0.000000e+00> : vector<2x64xf32>
    %32 = vector.multi_reduction <add>, %31, %cst_20 [2] : vector<2x64x4xf32> to vector<2x64xf32>
    %33 = vector.shape_cast %32 : vector<2x64xf32> to vector<2x64x1xf32>
    %34 = vector.broadcast %19 : vector<1x64x1xf32> to vector<2x64x1xf32>
    %35 = arith.addf %33, %34 : vector<2x64x1xf32>
    %36 = arith.negf %35 : vector<2x64x1xf32>
    %37 = math.exp %36 : vector<2x64x1xf32>
    %cst_21 = arith.constant 1.000000e+00 : f32
    %38 = vector.broadcast %cst_21 : f32 to vector<2x64x1xf32>
    %39 = arith.addf %38, %37 : vector<2x64x1xf32>
    %40 = arith.divf %38, %39 : vector<2x64x1xf32>
    %41 = vector.broadcast %40 : vector<2x64x1xf32> to vector<2x64x256xf32>
    %42 = arith.mulf %0, %41 : vector<2x64x256xf32>
    %c0_22 = arith.constant 0 : index
    %c0_23 = arith.constant 0 : index
    %c0_24 = arith.constant 0 : index
    %43 = vector.load %arg6[%c0_22, %c0_23, %c0_24] : memref<2x64x256xf32, #tpu.memory_space<vmem>>, vector<2x64x256xf32>
    tpu.vector_store %arg6[%c0_22, %c0_23, %c0_24], %42 {strides = array<i32>} : memref<2x64x256xf32, #tpu.memory_space<vmem>>, vector<2x64x256xf32>,
    return
  }
  func.func @transform_0(%arg0: i32) -> (i32, i32, i32) {
    %c0_i32 = arith.constant 0 : i32
    %c0_i32_0 = arith.constant 0 : i32
    %c0_i32_1 = arith.constant 0 : i32
    return %arg0, %c0_i32, %c0_i32_0 : i32, i32, i32
  }
  func.func @transform_1(%arg0: i32) -> (i32, i32, i32) {
    %c0_i32 = arith.constant 0 : i32
    %c0_i32_0 = arith.constant 0 : i32
    %c0_i32_1 = arith.constant 0 : i32
    %c0_i32_2 = arith.constant 0 : i32
    return %c0_i32, %c0_i32_0, %c0_i32_1 : i32, i32, i32
  }
  func.func @transform_2(%arg0: i32) -> (i32, i32, i32) {
    %c0_i32 = arith.constant 0 : i32
    %c0_i32_0 = arith.constant 0 : i32
    %c0_i32_1 = arith.constant 0 : i32
    %c0_i32_2 = arith.constant 0 : i32
    return %c0_i32, %c0_i32_0, %c0_i32_1 : i32, i32, i32
  }
  func.func @transform_3(%arg0: i32) -> (i32, i32, i32) {
    %c0_i32 = arith.constant 0 : i32
    %c0_i32_0 = arith.constant 0 : i32
    %c0_i32_1 = arith.constant 0 : i32
    %c0_i32_2 = arith.constant 0 : i32
    return %c0_i32, %c0_i32_0, %c0_i32_1 : i32, i32, i32
  }
  func.func @transform_4(%arg0: i32) -> (i32, i32, i32) {
    %c0_i32 = arith.constant 0 : i32
    %c0_i32_0 = arith.constant 0 : i32
    %c0_i32_1 = arith.constant 0 : i32
    %c0_i32_2 = arith.constant 0 : i32
    return %c0_i32, %c0_i32_0, %c0_i32_1 : i32, i32, i32
  }
  func.func @transform_5(%arg0: i32) -> (i32, i32, i32) {
    %c0_i32 = arith.constant 0 : i32
    %c0_i32_0 = arith.constant 0 : i32
    %c0_i32_1 = arith.constant 0 : i32
    return %arg0, %c0_i32, %c0_i32_0 : i32, i32, i32
  }
}

</mosaic_0001>

<bundles_post_ra>
// kernel: tpu_custom_call.1
= control target key start
LH: loop header
LB: loop body
LE: loop exit
PB: predicated region body
PF: predicated region fallthrough
CT: control target
= control target key end

     0   :  { %10 = vsyncpa [#allocation3], 0  ;;  %s1455_s0 = inlined_call_operand.hbm [shape: f32[2,64,256], index: 0, kind: input, shape index: {}]   ;;  %s1456_s1 = inlined_call_operand.vmem [shape: f32[1,64,4], index: 1, kind: input, shape index: {}]   ;;  %s1457_s2 = inlined_call_operand.vmem [shape: f32[1,1,4], index: 2, kind: input, shape index: {}]   ;;  %s1458_s3 = inlined_call_operand.vmem [shape: f32[1,64,4], index: 3, kind: input, shape index: {}]   ;;  %s1459_s4 = inlined_call_operand.vmem [shape: f32[1,64,1], index: 4, kind: input, shape index: {}]   ;;  %s1460_s5 = inlined_call_operand.hbm [shape: f32[2,64,256], index: 5, kind: output, shape index: {}]  }
   0x1   :  { %11 = vsyncpa [#allocation4], 0  ;;  %s1035_s18 = smov [#allocation2]   ;;  %s987_s22 = scalar_lea.hbm %s1455_s0, 4096 }
   0x2   :  { %s17_s19 = sshll.u32 %s1035_s18, 4  ;;  %p988_p0 = scmp.ne.s32.totalorder %s1455_s0, %s987_s22  ;;  %s18_s19 = int_to_ptr.vmem [resolvable:$true] %s17_s19 }
   0x3   :  { %p991_p1 = scmp.lt.u32.totalorder %s987_s22, %s1455_s0 }
   0x5   :  { %p993_p2 = pnand %p991_p1, %p988_p0 }
   0x7   :  { %996 = shalt.err (!%p993_p2)
}
   0x8   :  { %s997_s27 = scalar_lea.vmem %s18_s19, 4096  ;;  %p1002_p4 = scmp.lt.s32.totalorder %s18_s19, %s18_s19 }
   0x9   :  { %p998_p3 = scmp.ne.s32.totalorder %s18_s19, %s997_s27  ;;  %p1003_p5 = scmp.lt.s32.totalorder %s997_s27, %s997_s27 }
   0xb   :  { %p1004_p6 = por %p1003_p5, %p1002_p4 }
   0xd   :  { %p1005_p7 = pnand %p1004_p6, %p998_p3 }
   0xf   :  { %1008 = shalt.err (!%p1005_p7)
}
  0x10   :  { %s1036_s28 = smov 256   ;;  %s1037_s29 = smov 16  }
  0x11   :  { %23 = dma.hbm_to_vmem [thread:$0]  %s1455_s0, 4096, %s18_s19, [#allocation3], %s1036_s28, %s1036_s28, %s1037_s29  }
  0x12   :  { %1031 = dma.done.wait [#allocation3], 4096  }
  0x13   :  { %1032 = vsyncadd [#allocation3], 4294963200  ;;  %v51_v0 = vld [vmem:[#allocation2 + $0x80] sm:$0xff]  ;;  %v52_v1 = vld [vmem:[#allocation2 + $0x88] sm:$0xff]  ;;  %vm444_vm9 = vcmask 31744  }
  0x14   :  { %v35_v2 = vld [vmem:[#allocation2] sm:$0xff]  ;;  %v91_v3 = vadd.f32 %v52_v1, %v51_v0  ;;  %v36_v4 = vld [vmem:[#allocation2 + $0x8] sm:$0xff]  ;;  %v53_v5 = vld [vmem:[#allocation2 + $0x90] sm:$0xff]  ;;  %v147_v26 = vmul.f32 %v51_v0, %v51_v0  ;;  %v148_v27 = vmul.f32 %v52_v1, %v52_v1 }
  0x15   :  { %v54_v6 = vld [vmem:[#allocation2 + $0x98] sm:$0xff]  ;;  %v67_v7 = vadd.f32 %v36_v4, %v35_v2  ;;  %v37_v8 = vld [vmem:[#allocation2 + $0x10] sm:$0xff]  ;;  %v55_v12 = vld [vmem:[#allocation2 + $0xa0] sm:$0xff]  ;;  %v131_v20 = vmul.f32 %v35_v2, %v35_v2  ;;  %v132_v21 = vmul.f32 %v36_v4, %v36_v4  ;;  %v149_v23 = vmul.f32 %v53_v5, %v53_v5 }
  0x16   :  { %v38_v9 = vld [vmem:[#allocation2 + $0x18] sm:$0xff]  ;;  %92 = vadd.xlane.f32.xlu1 %v91_v3  ;;  %v94_v10 = vadd.f32 %v54_v6, %v53_v5  ;;  %v56_v13 = vld [vmem:[#allocation2 + $0xa8] sm:$0xff]  ;;  %v39_v14 = vld [vmem:[#allocation2 + $0x20] sm:$0xff]  ;;  %v133_v17 = vmul.f32 %v37_v8, %v37_v8  ;;  %v150_v24 = vmul.f32 %v54_v6, %v54_v6  ;;  %v187_v29 = vadd.f32 %v148_v27, %v147_v26 }
  0x17   :  { %68 = vadd.xlane.f32.xlu0 %v67_v7  ;;  %v70_v11 = vadd.f32 %v38_v9, %v37_v8  ;;  %v40_v15 = vld [vmem:[#allocation2 + $0x28] sm:$0xff]  ;;  %v97_v16 = vadd.f32 %v56_v13, %v55_v12  ;;  %v134_v18 = vmul.f32 %v38_v9, %v38_v9  ;;  %v163_v25 = vadd.f32 %v132_v21, %v131_v20  ;;  %v57_v30 = vld [vmem:[#allocation2 + $0xb0] sm:$0xff]  ;;  %v58_v31 = vld [vmem:[#allocation2 + $0xb8] sm:$0xff] }
  0x18   :  { %v73_v19 = vadd.f32 %v40_v15, %v39_v14  ;;  %v190_v28 = vadd.f32 %v150_v24, %v149_v23  ;;  %v41_v32 = vld [vmem:[#allocation2 + $0x30] sm:$0xff]  ;;  %v42_v33 = vld [vmem:[#allocation2 + $0x38] sm:$0xff]  ;;  %v100_v34 = vadd.f32 %v58_v31, %v57_v30  ;;  %v151_v35 = vmul.f32 %v55_v12, %v55_v12  ;;  %v59_v42 = vld [vmem:[#allocation2 + $0xc0] sm:$0xff] }
  0x19   :  { %v166_v22 = vadd.f32 %v134_v18, %v133_v17  ;;  %v152_v36 = vmul.f32 %v56_v13, %v56_v13  ;;  %v76_v37 = vadd.f32 %v42_v33, %v41_v32  ;;  %v135_v38 = vmul.f32 %v39_v14, %v39_v14  ;;  %v60_v43 = vld [vmem:[#allocation2 + $0xc8] sm:$0xff]  ;;  %v43_v44 = vld [vmem:[#allocation2 + $0x40] sm:$0xff]  ;;  %v61_v54 = vld [vmem:[#allocation2 + $0xd0] sm:$0xff] }
  0x1a   :  { %95 = vadd.xlane.f32.xlu1 %v94_v10  ;;  %v136_v39 = vmul.f32 %v40_v15, %v40_v15  ;;  %v44_v45 = vld [vmem:[#allocation2 + $0x48] sm:$0xff]  ;;  %v103_v46 = vadd.f32 %v60_v43, %v59_v42  ;;  %v153_v47 = vmul.f32 %v57_v30, %v57_v30  ;;  %v154_v48 = vmul.f32 %v58_v31, %v58_v31  ;;  %v62_v55 = vld [vmem:[#allocation2 + $0xd8] sm:$0xff]  ;;  %v45_v56 = vld [vmem:[#allocation2 + $0x50] sm:$0xff] }
  0x1b   :  { %71 = vadd.xlane.f32.xlu0 %v70_v11  ;;  %v193_v40 = vadd.f32 %v152_v36, %v151_v35  ;;  %v79_v49 = vadd.f32 %v44_v45, %v43_v44  ;;  %v137_v50 = vmul.f32 %v41_v32, %v41_v32  ;;  %v138_v51 = vmul.f32 %v42_v33, %v42_v33  ;;  %v46_v57 = vld [vmem:[#allocation2 + $0x58] sm:$0xff]  ;;  %v63_v2 = vld [vmem:[#allocation2 + $0xe0] sm:$0xff]  ;;  %v64_v3 = vld [vmem:[#allocation2 + $0xe8] sm:$0xff] }
  0x1c   :  { %v169_v41 = vadd.f32 %v136_v39, %v135_v38  ;;  %v196_v52 = vadd.f32 %v154_v48, %v153_v47  ;;  %v106_v58 = vadd.f32 %v62_v55, %v61_v54  ;;  %v155_v59 = vmul.f32 %v59_v42, %v59_v42  ;;  %v47_v4 = vld [vmem:[#allocation2 + $0x60] sm:$0xff]  ;;  %v48_v5 = vld [vmem:[#allocation2 + $0x68] sm:$0xff]  ;;  %v65_v14 = vld [vmem:[#allocation2 + $0xf0] sm:$0xff] }
  0x1d   :  { %v172_v53 = vadd.f32 %v138_v51, %v137_v50  ;;  %v156_v60 = vmul.f32 %v60_v43, %v60_v43  ;;  %v82_v61 = vadd.f32 %v46_v57, %v45_v56  ;;  %v139_v62 = vmul.f32 %v43_v44, %v43_v44  ;;  %v66_v15 = vld [vmem:[#allocation2 + $0xf8] sm:$0xff] }
  0x1e   :  { %98 = vadd.xlane.f32.xlu1 %v97_v16  ;;  %v140_v63 = vmul.f32 %v44_v45, %v44_v45  ;;  %v109_v6 = vadd.f32 %v64_v3, %v63_v2  ;;  %v157_v7 = vmul.f32 %v61_v54, %v61_v54  ;;  %v158_v8 = vmul.f32 %v62_v55, %v62_v55  ;;  %v49_v16 = vld [vmem:[#allocation2 + $0x70] sm:$0xff]  ;;  %v50_v17 = vld [vmem:[#allocation2 + $0x78] sm:$0xff] }
  0x1f   :  { %74 = vadd.xlane.f32.xlu0 %v73_v19  ;;  %v199_v0 = vadd.f32 %v156_v60, %v155_v59  ;;  %v85_v9 = vadd.f32 %v48_v5, %v47_v4  ;;  %v141_v10 = vmul.f32 %v45_v56, %v45_v56  ;;  %v142_v11 = vmul.f32 %v46_v57, %v46_v57 }
  0x20   :  { %v175_v1 = vadd.f32 %v140_v63, %v139_v62  ;;  %v202_v12 = vadd.f32 %v158_v8, %v157_v7  ;;  %v112_v18 = vadd.f32 %v66_v15, %v65_v14  ;;  %v159_v19 = vmul.f32 %v63_v2, %v63_v2 }
  0x21   :  { %v178_v13 = vadd.f32 %v142_v11, %v141_v10  ;;  %v160_v20 = vmul.f32 %v64_v3, %v64_v3  ;;  %v88_v21 = vadd.f32 %v50_v17, %v49_v16  ;;  %v144_v23 = vmul.f32 %v48_v5, %v48_v5 }
  0x22   :  { %167 = vadd.xlane.f32.xlu1 %v166_v22  ;;  %v143_v22 = vmul.f32 %v47_v4, %v47_v4  ;;  %v162_v26 = vmul.f32 %v66_v15, %v66_v15 }
  0x23   :  { %164 = vadd.xlane.f32.xlu0 %v163_v25  ;;  %v205_v24 = vadd.f32 %v160_v20, %v159_v19  ;;  %v161_v25 = vmul.f32 %v65_v14, %v65_v14 }
  0x24   :  { %v181_v27 = vadd.f32 %v144_v23, %v143_v22 }
  0x25   :  { %v208_v30 = vadd.f32 %v162_v26, %v161_v25 }
  0x26   :  { %191 = vadd.xlane.f32.xlu1 %v190_v28  ;;  %v145_v28 = vmul.f32 %v49_v16, %v49_v16 }
  0x27   :  { %188 = vadd.xlane.f32.xlu0 %v187_v29  ;;  %v146_v29 = vmul.f32 %v50_v17, %v50_v17 }
  0x29   :  { %v184_v31 = vadd.f32 %v146_v29, %v145_v28 }
  0x2a   :  { %101 = vadd.xlane.f32.xlu1 %v100_v34 }
  0x2b   :  { %77 = vadd.xlane.f32.xlu0 %v76_v37 }
  0x2e   :  { %194 = vadd.xlane.f32.xlu1 %v193_v40 }
  0x2f   :  { %170 = vadd.xlane.f32.xlu0 %v169_v41 }
  0x32   :  { %104 = vadd.xlane.f32.xlu1 %v103_v46 }
  0x33   :  { %80 = vadd.xlane.f32.xlu0 %v79_v49 }
  0x36   :  { %197 = vadd.xlane.f32.xlu1 %v196_v52 }
  0x37   :  { %173 = vadd.xlane.f32.xlu0 %v172_v53 }
  0x3a   :  { %107 = vadd.xlane.f32.xlu1 %v106_v58 }
  0x3b   :  { %83 = vadd.xlane.f32.xlu0 %v82_v61 }
  0x3e   :  { %200 = vadd.xlane.f32.xlu1 %v199_v0 }
  0x3f   :  { %176 = vadd.xlane.f32.xlu0 %v175_v1 }
  0x42   :  { %110 = vadd.xlane.f32.xlu1 %v109_v6 }
  0x43   :  { %86 = vadd.xlane.f32.xlu0 %v85_v9 }
  0x46   :  { %203 = vadd.xlane.f32.xlu1 %v202_v12 }
  0x47   :  { %179 = vadd.xlane.f32.xlu0 %v178_v13 }
  0x4a   :  { %113 = vadd.xlane.f32.xlu1 %v112_v18 }
  0x4b   :  { %89 = vadd.xlane.f32.xlu0 %v88_v21 }
  0x4e   :  { %206 = vadd.xlane.f32.xlu1 %v205_v24 }
  0x4f   :  { %182 = vadd.xlane.f32.xlu0 %v181_v27 }
  0x52   :  { %209 = vadd.xlane.f32.xlu1 %v208_v30 }
  0x53   :  { %185 = vadd.xlane.f32.xlu0 %v184_v31 }
  0xa3   :  { %v93_v32 = vpop.xlane.xlu1 %92 }
  0xa4   :  { %v69_v33 = vpop.xlane.xlu0 %68  ;;  %v1089_v41 = vmul.f32 0.00390625, %v93_v32 }
  0xa5   :  { %v1087_v39 = vmul.f32 0.00390625, %v69_v33 }
  0xa6   :  { %v235_v51 = vmul.f32 %v1089_v41, %v1089_v41 }
  0xa7   :  { %v96_v34 = vpop.xlane.xlu1 %95  ;;  %v227_v46 = vmul.f32 %v1087_v39, %v1087_v39 }
  0xa8   :  { %v72_v35 = vpop.xlane.xlu0 %71  ;;  %v1091_v42 = vmul.f32 0.00390625, %v96_v34 }
  0xa9   :  { %v1085_v37 = vmul.f32 0.00390625, %v72_v35 }
  0xaa   :  { %v236_v52 = vmul.f32 %v1091_v42, %v1091_v42 }
  0xab   :  { %v99_v36 = vpop.xlane.xlu1 %98  ;;  %v228_v43 = vmul.f32 %v1085_v37, %v1085_v37 }
  0xac   :  { %v75_v38 = vpop.xlane.xlu0 %74  ;;  %v1105_v59 = vmul.f32 0.00390625, %v99_v36 }
  0xad   :  { %v1117_v5 = vmul.f32 0.00390625, %v75_v38 }
  0xae   :  { %v237_v2 = vmul.f32 %v1105_v59, %v1105_v59 }
  0xaf   :  { %v168_v40 = vpop.xlane.xlu1 %167  ;;  %v229_v13 = vmul.f32 %v1117_v5, %v1117_v5 }
  0xb0   :  { %v212_v44 = vmul.f32 0.00390625, %v168_v40  ;;  %v165_v45 = vpop.xlane.xlu0 %164 }
  0xb1   :  { %v211_v47 = vmul.f32 0.00390625, %v165_v45 }
  0xb2   :  { %v244_v48 = vsub.f32 %v212_v44, %v228_v43 }
  0xb3   :  { %v243_v49 = vsub.f32 %v211_v47, %v227_v46  ;;  %v192_v50 = vpop.xlane.xlu1 %191 }
  0xb4   :  { %v220_v53 = vmul.f32 0.00390625, %v192_v50  ;;  %v189_v54 = vpop.xlane.xlu0 %188  ;;  %v1101_v55 = vmax.f32 %v244_v48, 0.0 }
  0xb5   :  { %v219_v56 = vmul.f32 0.00390625, %v189_v54  ;;  %v1103_v57 = vmax.f32 %v243_v49, 0.0 }
  0xb6   :  { %v252_v60 = vsub.f32 %v220_v53, %v236_v52  ;;  %859 = vrsqrt.f32 %v1101_v55  ;;  %vm284_vm0 = vcmp.eq.f32.partialorder %v1101_v55, inf  ;;  %vm286_vm1 = vcmp.eq.f32.partialorder %v1101_v55, 0.0 }
  0xb7   :  { %v102_v58 = vpop.xlane.xlu1 %101  ;;  %v251_v61 = vsub.f32 %v219_v56, %v235_v51  ;;  %861 = vrsqrt.f32 %v1103_v57  ;;  %v287_v36 = vand.u32 2147483648, %v1101_v55  ;;  %vm277_vm2 = vcmp.eq.f32.partialorder %v1103_v57, inf }
  0xb8   :  { %v78_v62 = vpop.xlane.xlu0 %77  ;;  %v1108_v63 = vmax.f32 %v252_v60, 0.0  ;;  %v1119_v9 = vmul.f32 0.00390625, %v102_v58  ;;  %v280_v43 = vand.u32 2147483648, %v1103_v57  ;;  %vm279_vm6 = vcmp.eq.f32.partialorder %v1103_v57, 0.0 }
  0xb9   :  { %v1110_v0 = vmax.f32 %v251_v61, 0.0  ;;  %v1125_v15 = vmul.f32 0.00390625, %v78_v62 }
  0xba   :  { %863 = vrsqrt.f32 %v1108_v63  ;;  %v238_v18 = vmul.f32 %v1119_v9, %v1119_v9  ;;  %vm340_vm3 = vcmp.eq.f32.partialorder %v1108_v63, inf  ;;  %vm342_vm4 = vcmp.eq.f32.partialorder %v1108_v63, 0.0 }
  0xbb   :  { %v195_v1 = vpop.xlane.xlu1 %194  ;;  %865 = vrsqrt.f32 %v1110_v0  ;;  %v230_v25 = vmul.f32 %v1125_v15, %v1125_v15  ;;  %v343_v44 = vand.u32 2147483648, %v1108_v63  ;;  %vm333_vm5 = vcmp.eq.f32.partialorder %v1110_v0, inf }
  0xbc   :  { %v171_v3 = vpop.xlane.xlu0 %170  ;;  %v221_v4 = vmul.f32 0.00390625, %v195_v1  ;;  %vm335_vm7 = vcmp.eq.f32.partialorder %v1110_v0, 0.0  ;;  %v336_v53 = vand.u32 2147483648, %v1110_v0 }
  0xbd   :  { %v213_v10 = vmul.f32 0.00390625, %v171_v3 }
  0xbe   :  { %v253_v7 = vsub.f32 %v221_v4, %v237_v2 }
  0xbf   :  { %v105_v6 = vpop.xlane.xlu1 %104  ;;  %v245_v19 = vsub.f32 %v213_v10, %v229_v13 }
  0xc0   :  { %v81_v8 = vpop.xlane.xlu0 %80  ;;  %v1121_v11 = vmax.f32 %v253_v7, 0.0  ;;  %v860_v12 = vpop.eup %859  ;;  %v1138_v30 = vmul.f32 0.00390625, %v105_v6 }
  0xc1   :  { %v862_v17 = vpop.eup %861  ;;  %v283_v21 = vmul.f32 %v860_v12, %v1101_v55  ;;  %v1136_v29 = vmax.f32 %v245_v19, 0.0  ;;  %v1151_v45 = vmul.f32 0.00390625, %v81_v8 }
  0xc2   :  { %867 = vrsqrt.f32 %v1121_v11  ;;  %v276_v28 = vmul.f32 %v862_v17, %v1103_v57  ;;  %v239_v49 = vmul.f32 %v1138_v30, %v1138_v30  ;;  %vm347_vm8 = vcmp.eq.f32.partialorder %v1121_v11, inf }
  0xc3   :  { %v198_v14 = vpop.xlane.xlu1 %197  ;;  %v285_v32 = vsel %vm284_vm0, %v1101_v55, %v283_v21  ;;  %869 = vrsqrt.f32 %v1136_v29  ;;  %v231_v58 = vmul.f32 %v1151_v45, %v1151_v45  ;;  %vm349_vm10 = vcmp.eq.f32.partialorder %v1121_v11, 0.0 }
  0xc4   :  { %v174_v16 = vpop.xlane.xlu0 %173  ;;  %v864_v20 = vpop.eup %863  ;;  %v222_v23 = vmul.f32 0.00390625, %v198_v14  ;;  %v288_v47 = vsel %vm286_vm1, %v287_v36, %v285_v32  ;;  %v278_v48 = vsel %vm277_vm2, %v1103_v57, %v276_v28  ;;  %vm291_vm11 = vcmp.eq.f32.partialorder %v1136_v29, inf }
  0xc5   :  { %v866_v22 = vpop.eup %865  ;;  %v214_v26 = vmul.f32 0.00390625, %v174_v16  ;;  %v339_v33 = vmul.f32 %v864_v20, %v1108_v63  ;;  %v281_v56 = vsel %vm279_vm6, %v280_v43, %v278_v48  ;;  %v388_v1 = vadd.f32 %v288_v47, %v1085_v37 }
  0xc6   :  { %v254_v31 = vsub.f32 %v222_v23, %v238_v18  ;;  %v332_v34 = vmul.f32 %v866_v22, %v1110_v0  ;;  %v387_v7 = vadd.f32 %v281_v56, %v1087_v39  ;;  %v403_v39 = vld [vmem:[%s1456_s1] sm:$0xff]  ;;  %v294_v21 = vand.u32 2147483648, %v1136_v29 }
  0xc7   :  { %v108_v24 = vpop.xlane.xlu1 %107  ;;  %v246_v35 = vsub.f32 %v214_v26, %v230_v25  ;;  %v341_v50 = vsel %vm340_vm3, %v1108_v63, %v339_v33  ;;  %vm293_vm12 = vcmp.eq.f32.partialorder %v1136_v29, 0.0 }
  0xc8   :  { %v84_v27 = vpop.xlane.xlu0 %83  ;;  %v1146_v38 = vmax.f32 %v254_v31, 0.0  ;;  %v334_v51 = vsel %vm333_vm5, %v1110_v0, %v332_v34  ;;  %v344_v57 = vsel %vm342_vm4, %v343_v44, %v341_v50  ;;  %v1173_v3 = vmul.f32 0.00390625, %v108_v24  ;;  %v404_v0 = vld [vmem:[%s1456_s1 + $0x8] sm:$0xff] }
  0xc9   :  { %v1162_v52 = vmax.f32 %v246_v35, 0.0  ;;  %v337_v2 = vsel %vm335_vm7, %v336_v53, %v334_v51  ;;  %v1182_v37 = vmul.f32 0.00390625, %v84_v27  ;;  %v396_v10 = vadd.f32 %v344_v57, %v1091_v42 }
  0xca   :  { %871 = vrsqrt.f32 %v1146_v38  ;;  %v395_v12 = vadd.f32 %v337_v2, %v1089_v41  ;;  %v429_v17 = vmul.f32 %v404_v0, %v388_v1  ;;  %v240_v18 = vmul.f32 %v1173_v3, %v1173_v3 }
  0xcb   :  { %v201_v40 = vpop.xlane.xlu1 %200  ;;  %873 = vrsqrt.f32 %v1162_v52  ;;  %v350_v41 = vand.u32 2147483648, %v1121_v11  ;;  %v232_v22 = vmul.f32 %v1182_v37, %v1182_v37  ;;  %v1205_v25 = vmul.f32 %v403_v39, %v387_v7 }
  0xcc   :  { %v177_v46 = vpop.xlane.xlu0 %176  ;;  %v868_v55 = vpop.eup %867  ;;  %v223_v60 = vmul.f32 0.00390625, %v201_v40  ;;  %v437_v26 = vmul.f32 %v404_v0, %v396_v10  ;;  %v436_v27 = vmul.f32 %v403_v39, %v395_v12  ;;  %v1209_v32 = vsel %vm444_vm9, %v429_v17, 0.0 }
  0xcd   :  { %v215_v61 = vmul.f32 0.00390625, %v177_v46  ;;  %v346_v8 = vmul.f32 %v868_v55, %v1121_v11  ;;  %v870_v24 = vpop.eup %869  ;;  %vm354_vm13 = vcmp.eq.f32.partialorder %v1146_v38, inf  ;;  %vm356_vm14 = vcmp.eq.f32.partialorder %v1146_v38, 0.0 }
  0xce   :  { %v255_v4 = vsub.f32 %v223_v60, %v239_v49  ;;  %v290_v43 = vmul.f32 %v870_v24, %v1136_v29  ;;  %v357_v44 = vand.u32 2147483648, %v1146_v38  ;;  %v467_v50 = vsel %vm444_vm9, %v437_v26, 0.0 }
  0xcf   :  { %v111_v54 = vpop.xlane.xlu1 %110  ;;  %v247_v6 = vsub.f32 %v215_v61, %v231_v58  ;;  %v348_v42 = vsel %vm347_vm8, %v1121_v11, %v346_v8  ;;  %v466_v11 = vsel %vm444_vm9, %v436_v27, 0.0  ;;  %vm298_vm15 = vcmp.eq.f32.partialorder %v1162_v52, inf  ;;  %v405_v58 = vld [vmem:[%s1456_s1 + $0x10] sm:$0xff] }
  0xd0   :  { %v87_v62 = vpop.xlane.xlu0 %86  ;;  %v1186_v13 = vmax.f32 %v255_v4, 0.0  ;;  %v1212_v33 = vmul.f32 0.00390625, %v111_v54  ;;  %v351_v36 = vsel %vm349_vm10, %v350_v41, %v348_v42  ;;  %vm300_vm0 = vcmp.eq.f32.partialorder %v1162_v52, 0.0 }
  0xd1   :  { %v1188_v14 = vmax.f32 %v247_v6, 0.0  ;;  %v1229_v53 = vmul.f32 0.00390625, %v87_v62  ;;  %v397_v54 = vadd.f32 %v351_v36, %v1105_v59  ;;  %v301_v60 = vand.u32 2147483648, %v1162_v52  ;;  %v406_v36 = vld [vmem:[%s1456_s1 + $0x18] sm:$0xff] }
  0xd2   :  { %875 = vrsqrt.f32 %v1186_v13  ;;  %v241_v55 = vmul.f32 %v1212_v33, %v1212_v33  ;;  %v468_v61 = vadd.f32 %v467_v50, %v466_v11  ;;  %v292_v62 = vsel %vm291_vm11, %v1136_v29, %v290_v43 }
  0xd3   :  { %v204_v63 = vpop.xlane.xlu1 %203  ;;  %877 = vrsqrt.f32 %v1188_v14  ;;  %v233_v6 = vmul.f32 %v1229_v53, %v1229_v53  ;;  %vm361_vm1 = vcmp.eq.f32.partialorder %v1186_v13, inf  ;;  %v295_v17 = vsel %vm293_vm12, %v294_v21, %v292_v62 }
  0xd4   :  { %v180_v16 = vpop.xlane.xlu0 %179  ;;  %v224_v19 = vmul.f32 0.00390625, %v204_v63  ;;  %v872_v31 = vpop.eup %871  ;;  %v438_v63 = vmul.f32 %v405_v58, %v397_v54  ;;  %vm363_vm2 = vcmp.eq.f32.partialorder %v1186_v13, 0.0  ;;  %v364_v41 = vand.u32 2147483648, %v1186_v13 }
  0xd5   :  { %v216_v20 = vmul.f32 0.00390625, %v180_v16  ;;  %v874_v49 = vpop.eup %873  ;;  %v353_v51 = vmul.f32 %v872_v31, %v1146_v38  ;;  %v389_v26 = vadd.f32 %v295_v17, %v1117_v5  ;;  %vm305_vm3 = vcmp.eq.f32.partialorder %v1188_v14, inf }
  0xd6   :  { %v256_v34 = vsub.f32 %v224_v19, %v240_v18  ;;  %v297_v1 = vmul.f32 %v874_v49, %v1162_v52  ;;  %v308_v49 = vand.u32 2147483648, %v1188_v14  ;;  %vm307_vm6 = vcmp.eq.f32.partialorder %v1188_v14, 0.0 }
  0xd7   :  { %v114_v23 = vpop.xlane.xlu1 %113  ;;  %v248_v35 = vsub.f32 %v216_v20, %v232_v22  ;;  %v355_v4 = vsel %vm354_vm13, %v1146_v38, %v353_v51  ;;  %v469_v38 = vsel %vm444_vm9, %v438_v63, 0.0 }
  0xd8   :  { %v90_v28 = vpop.xlane.xlu0 %89  ;;  %v1218_v40 = vmul.f32 0.00390625, %v114_v23  ;;  %v1222_v46 = vmax.f32 %v256_v34, 0.0  ;;  %v358_v19 = vsel %vm356_vm14, %v357_v44, %v355_v4  ;;  %v299_v20 = vsel %vm298_vm15, %v1162_v52, %v297_v1 }
  0xd9   :  { %v1224_v47 = vmax.f32 %v248_v35, 0.0  ;;  %v1267_v29 = vmul.f32 0.00390625, %v90_v28  ;;  %v398_v31 = vadd.f32 %v358_v19, %v1119_v9  ;;  %v302_v34 = vsel %vm300_vm0, %v301_v60, %v299_v20 }
  0xda   :  { %879 = vrsqrt.f32 %v1222_v46  ;;  %v242_v59 = vmul.f32 %v1218_v40, %v1218_v40  ;;  %vm368_vm4 = vcmp.eq.f32.partialorder %v1222_v46, inf  ;;  %v371_v9 = vand.u32 2147483648, %v1222_v46 }
  0xdb   :  { %v207_v48 = vpop.xlane.xlu1 %206  ;;  %881 = vrsqrt.f32 %v1224_v47  ;;  %vm370_vm5 = vcmp.eq.f32.partialorder %v1222_v46, 0.0  ;;  %v234_v44 = vmul.f32 %v1267_v29, %v1267_v29  ;;  %v439_v11 = vmul.f32 %v406_v36, %v398_v31 }
  0xdc   :  { %v183_v56 = vpop.xlane.xlu0 %182  ;;  %v225_v57 = vmul.f32 0.00390625, %v207_v48  ;;  %v876_v0 = vpop.eup %875  ;;  %v390_v48 = vadd.f32 %v302_v34, %v1125_v15  ;;  %v430_v60 = vmul.f32 %v405_v58, %v389_v26  ;;  %v407_v15 = vld [vmem:[%s1456_s1 + $0x20] sm:$0xff]  ;;  %v470_v62 = vadd.f32 %v469_v38, %v468_v61 }
  0xdd   :  { %v217_v7 = vmul.f32 0.00390625, %v183_v56  ;;  %v360_v10 = vmul.f32 %v876_v0, %v1186_v13  ;;  %v878_v16 = vpop.eup %877  ;;  %v445_v56 = vsel %vm444_vm9, %v1205_v25, 0.0  ;;  %vm312_vm7 = vcmp.eq.f32.partialorder %v1224_v47, inf }
  0xde   :  { %v257_v12 = vsub.f32 %v225_v57, %v241_v55  ;;  %v304_v27 = vmul.f32 %v878_v16, %v1188_v14  ;;  %vm314_vm8 = vcmp.eq.f32.partialorder %v1224_v47, 0.0  ;;  %v471_v25 = vsel %vm444_vm9, %v439_v11, 0.0 }
  0xdf   :  { %v210_v2 = vpop.xlane.xlu1 %209  ;;  %v249_v39 = vsub.f32 %v217_v7, %v233_v6  ;;  %v362_v23 = vsel %vm361_vm1, %v1186_v13, %v360_v10  ;;  %v315_v61 = vand.u32 2147483648, %v1224_v47  ;;  %v447_v34 = vadd.f32 %v1209_v32, %v445_v56 }
  0xe0   :  { %v226_v8 = vmul.f32 0.00390625, %v210_v2  ;;  %v1264_v42 = vmax.f32 %v257_v12, 0.0  ;;  %v186_v22 = vpop.xlane.xlu0 %185  ;;  %v365_v5 = vsel %vm363_vm2, %v364_v41, %v362_v23  ;;  %v306_v13 = vsel %vm305_vm3, %v1188_v14, %v304_v27  ;;  %v408_v14 = vld [vmem:[%s1456_s1 + $0x28] sm:$0xff] }
  0xe1   :  { %v1269_v21 = vmax.f32 %v249_v39, 0.0  ;;  %v218_v28 = vmul.f32 0.00390625, %v186_v22  ;;  %v399_v51 = vadd.f32 %v365_v5, %v1138_v30  ;;  %v309_v1 = vsel %vm307_vm6, %v308_v49, %v306_v13 }
  0xe2   :  { %v258_v18 = vsub.f32 %v226_v8, %v242_v59  ;;  %883 = vrsqrt.f32 %v1264_v42  ;;  %v431_v30 = vmul.f32 %v406_v36, %v390_v48  ;;  %v391_v4 = vadd.f32 %v309_v1, %v1151_v45 }
  0xe3   :  { %885 = vrsqrt.f32 %v1269_v21  ;;  %v250_v55 = vsub.f32 %v218_v28, %v234_v44  ;;  %v440_v58 = vmul.f32 %v407_v15, %v399_v51  ;;  %vm375_vm10 = vcmp.eq.f32.partialorder %v1264_v42, inf }
  0xe4   :  { %v1271_v24 = vmax.f32 %v258_v18, 0.0  ;;  %v880_v35 = vpop.eup %879  ;;  %vm377_vm11 = vcmp.eq.f32.partialorder %v1264_v42, 0.0  ;;  %vm319_vm12 = vcmp.eq.f32.partialorder %v1269_v21, inf  ;;  %vm321_vm13 = vcmp.eq.f32.partialorder %v1269_v21, 0.0  ;;  %v409_v18 = vld [vmem:[%s1456_s1 + $0x30] sm:$0xff] }
  0xe5   :  { %v882_v43 = vpop.eup %881  ;;  %v367_v52 = vmul.f32 %v880_v35, %v1222_v46  ;;  %v1307_v57 = vmax.f32 %v250_v55, 0.0  ;;  %v322_v10 = vand.u32 2147483648, %v1269_v21  ;;  %v473_v12 = vsel %vm444_vm9, %v440_v58, 0.0 }
  0xe6   :  { %887 = vrsqrt.f32 %v1271_v24  ;;  %v311_v50 = vmul.f32 %v882_v43, %v1224_v47  ;;  %vm382_vm14 = vcmp.eq.f32.partialorder %v1271_v24, inf  ;;  %vm384_vm15 = vcmp.eq.f32.partialorder %v1271_v24, 0.0 }
  0xe7   :  { %v369_v54 = vsel %vm368_vm4, %v1222_v46, %v367_v52  ;;  %889 = vrsqrt.f32 %v1307_v57  ;;  %v385_v17 = vand.u32 2147483648, %v1271_v24  ;;  %v448_v22 = vsel %vm444_vm9, %v430_v60, 0.0 }
  0xe8   :  { %v372_v59 = vsel %vm370_vm5, %v371_v9, %v369_v54  ;;  %v313_v2 = vsel %vm312_vm7, %v1224_v47, %v311_v50  ;;  %v472_v23 = vadd.f32 %v471_v25, %v470_v62  ;;  %v450_v36 = vsel %vm444_vm9, %v431_v30, 0.0 }
  0xe9   :  { %v400_v46 = vadd.f32 %v372_v59, %v1173_v3  ;;  %v378_v3 = vand.u32 2147483648, %v1264_v42  ;;  %v316_v7 = vsel %vm314_vm8, %v315_v61, %v313_v2  ;;  %v449_v43 = vadd.f32 %v448_v22, %v447_v34 }
  0xea   :  { %v392_v39 = vadd.f32 %v316_v7, %v1182_v37  ;;  %v432_v37 = vmul.f32 %v407_v15, %v391_v4  ;;  %v474_v28 = vadd.f32 %v473_v12, %v472_v23  ;;  %vm326_vm0 = vcmp.eq.f32.partialorder %v1307_v57, inf }
  0xeb   :  { %v441_v47 = vmul.f32 %v408_v14, %v400_v46  ;;  %v451_v50 = vadd.f32 %v450_v36, %v449_v43  ;;  %vm328_vm1 = vcmp.eq.f32.partialorder %v1307_v57, 0.0  ;;  %v419_v36 = vld [vmem:[%s1458_s3 + $0x38] sm:$0xff] }
  0xec   :  { %v884_v0 = vpop.eup %883  ;;  %v433_v5 = vmul.f32 %v408_v14, %v392_v39  ;;  %v452_v32 = vsel %vm444_vm9, %v432_v37, 0.0  ;;  %v412_v39 = vld [vmem:[%s1458_s3] sm:$0xff] }
  0xed   :  { %v886_v6 = vpop.eup %885  ;;  %v374_v8 = vmul.f32 %v884_v0, %v1264_v42  ;;  %v475_v27 = vsel %vm444_vm9, %v441_v47, 0.0  ;;  %v453_v55 = vadd.f32 %v452_v32, %v451_v50 }
  0xee   :  { %v318_v63 = vmul.f32 %v886_v6, %v1269_v21  ;;  %v476_v52 = vadd.f32 %v475_v27, %v474_v28  ;;  %v454_v51 = vsel %vm444_vm9, %v433_v5, 0.0  ;;  %v418_v5 = vld [vmem:[%s1458_s3 + $0x30] sm:$0xff] }
  0xef   :  { %v376_v16 = vsel %vm375_vm10, %v1264_v42, %v374_v8  ;;  %v455_v62 = vadd.f32 %v454_v51, %v453_v55 }
  0xf0   :  { %v888_v45 = vpop.eup %887  ;;  %v379_v19 = vsel %vm377_vm11, %v378_v3, %v376_v16  ;;  %v320_v20 = vsel %vm319_vm12, %v1269_v21, %v318_v63 }
  0xf1   :  { %v381_v41 = vmul.f32 %v888_v45, %v1271_v24  ;;  %v401_v38 = vadd.f32 %v379_v19, %v1212_v33  ;;  %v323_v26 = vsel %vm321_vm13, %v322_v10, %v320_v20  ;;  %v410_v33 = vld [vmem:[%s1456_s1 + $0x38] sm:$0xff]  ;;  %v890_v9 = vpop.eup %889  ;;  %v414_v20 = vld [vmem:[%s1458_s3 + $0x10] sm:$0xff] }
  0xf2   :  { %v393_v31 = vadd.f32 %v323_v26, %v1229_v53  ;;  %v325_v49 = vmul.f32 %v890_v9, %v1307_v57  ;;  %v415_v19 = vld [vmem:[%s1458_s3 + $0x18] sm:$0xff] }
  0xf3   :  { %v383_v42 = vsel %vm382_vm14, %v1271_v24, %v381_v41  ;;  %v442_v35 = vmul.f32 %v409_v18, %v401_v38  ;;  %v329_v24 = vand.u32 2147483648, %v1307_v57 }
  0xf4   :  { %v386_v21 = vsel %vm384_vm15, %v385_v17, %v383_v42  ;;  %v434_v48 = vmul.f32 %v409_v18, %v393_v31  ;;  %v327_v54 = vsel %vm326_vm0, %v1307_v57, %v325_v49  ;;  %v491_v57 = vlaneseq  ;;  %v413_v17 = vld [vmem:[%s1458_s3 + $0x8] sm:$0xff]  ;;  %v416_v42 = vld [vmem:[%s1458_s3 + $0x20] sm:$0xff] }
  0xf5   :  { %v402_v53 = vadd.f32 %v386_v21, %v1218_v40  ;;  %v477_v44 = vsel %vm444_vm9, %v442_v35, 0.0  ;;  %v330_v60 = vsel %vm328_vm1, %v329_v24, %v327_v54  ;;  %v417_v31 = vld [vmem:[%s1458_s3 + $0x28] sm:$0xff] }
  0xf6   :  { %v478_v11 = vadd.f32 %v477_v44, %v476_v52  ;;  %v456_v15 = vsel %vm444_vm9, %v434_v48, 0.0  ;;  %v394_v59 = vadd.f32 %v330_v60, %v1267_v29  ;;  %v492_v8 = vshrl.u32 %v491_v57, 7  ;;  %v411_v29 = vld [vmem:[%s1457_s2] sm:$0x1]  ;;  %v422_v57 = vld [vmem:[%s1459_s4 + $0x10] sm:$0xff] }
  0xf7   :  { %v443_v13 = vmul.f32 %v410_v33, %v402_v53  ;;  %v457_v46 = vadd.f32 %v456_v15, %v455_v62 }
  0xf8   :  { %v435_v30 = vmul.f32 %v410_v33, %v394_v59  ;;  %v493_v45 = vsub.s32 0, %v492_v8 }
  0xf9   :  { %v479_v40 = vsel %vm444_vm9, %v443_v13, 0.0 }
  0xfa   :  { %v480_v56 = vadd.f32 %v479_v40, %v478_v11  ;;  %v458_v2 = vsel %vm444_vm9, %v435_v30, 0.0 }
  0xfb   :  { %v459_v25 = vadd.f32 %v458_v2, %v457_v46  ;;  %v1038_v46 = vmov 0   ;;  %v421_v2 = vld [vmem:[%s1459_s4 + $0x8] sm:$0xff] }
  0xfc   :  { %v481_v1 = vrot.slane %v480_v56, 4  ;;  %858 = vset.pattern.permute.xlu1 %v1038_v46  ;;  %857 = vset.pattern.permute.xlu0 %v1038_v46 }
  0xfd   :  { %v460_v14 = vrot.slane %v459_v25, 4 }
  0xfe   :  { %v482_v58 = vadd.f32 %v481_v1, %v480_v56 }
  0xff   :  { %v461_v61 = vadd.f32 %v460_v14, %v459_v25  ;;  %v420_v25 = vld [vmem:[%s1459_s4] sm:$0xff] }
 0x100   :  { %v483_v0 = vrot.slane %v482_v58, 2 }
 0x101   :  { %v462_v4 = vrot.slane %v461_v61, 2 }
 0x102   :  { %v484_v6 = vadd.f32 %v483_v0, %v482_v58 }
 0x103   :  { %v463_v3 = vadd.f32 %v462_v4, %v461_v61  ;;  %v423_v4 = vld [vmem:[%s1459_s4 + $0x18] sm:$0xff] }
 0x104   :  { %v485_v63 = vrot.slane %v484_v6, 1 }
 0x105   :  { %v464_v7 = vrot.slane %v463_v3, 1 }
 0x106   :  { %v486_v16 = vadd.f32 %v485_v63, %v484_v6  ;;  %v425_v63 = vld [vmem:[%s1459_s4 + $0x28] sm:$0xff] }
 0x107   :  { %v465_v47 = vadd.f32 %v464_v7, %v463_v3 }
 0x108   :  { %v488_v23 = vadd.f32 %v486_v16, %v411_v29 }
 0x109   :  { %v487_v10 = vadd.f32 %v465_v47, %v411_v29 }
 0x10a   :  { %v490_v34 = vmax.f32 %v488_v23, 0.0 }
 0x10b   :  { %v489_v12 = vmax.f32 %v487_v10, 0.0  ;;  %v424_v10 = vld [vmem:[%s1459_s4 + $0x20] sm:$0xff] }
 0x10c   :  { %v498_v53 = vrot.slane %v490_v34, %v493_v45 }
 0x10d   :  { %v494_v18 = vrot.slane %v489_v12, %v493_v45 }
 0x10e   :  { %v508_v13 = vmul.f32 %v498_v53, %v413_v17  ;;  %v507_v49 = vmul.f32 %v498_v53, %v412_v39  ;;  %v510_v24 = vmul.f32 %v498_v53, %v415_v19  ;;  %v509_v51 = vmul.f32 %v498_v53, %v414_v20 }
 0x10f   :  { %v500_v41 = vmul.f32 %v494_v18, %v413_v17  ;;  %v499_v22 = vmul.f32 %v494_v18, %v412_v39  ;;  %v502_v37 = vmul.f32 %v494_v18, %v415_v19  ;;  %v501_v27 = vmul.f32 %v494_v18, %v414_v20 }
 0x110   :  { %v504_v33 = vmul.f32 %v494_v18, %v417_v31  ;;  %v503_v21 = vmul.f32 %v494_v18, %v416_v42  ;;  %v506_v52 = vmul.f32 %v494_v18, %v419_v36  ;;  %v505_v44 = vmul.f32 %v494_v18, %v418_v5 }
 0x111   :  { %v518_v38 = vsel %vm444_vm9, %v500_v41, 0.0  ;;  %v515_v26 = vsel %vm444_vm9, %v499_v22, 0.0  ;;  %v524_v28 = vsel %vm444_vm9, %v502_v37, 0.0  ;;  %v521_v35 = vsel %vm444_vm9, %v501_v27, 0.0  ;;  %v1433_v41 = vld [vmem:[%s1459_s4 + $0x30] sm:$0xff]  ;;  %v427_v37 = vld [vmem:[%s1459_s4 + $0x38] sm:$0xff] }
 0x112   :  { %519 = vadd.xlane.f32.xlu1 %v518_v38  ;;  %516 = vadd.xlane.f32.xlu0 %v515_v26  ;;  %v530_v9 = vsel %vm444_vm9, %v504_v33, 0.0  ;;  %v527_v43 = vsel %vm444_vm9, %v503_v21, 0.0  ;;  %v536_v32 = vsel %vm444_vm9, %v506_v52, 0.0  ;;  %v533_v48 = vsel %vm444_vm9, %v505_v44, 0.0  ;;  %s1039_s4 = smov [#allocation5]  }
 0x113   :  { %v542_v50 = vsel %vm444_vm9, %v508_v13, 0.0  ;;  %v539_v11 = vsel %vm444_vm9, %v507_v49, 0.0  ;;  %v548_v40 = vsel %vm444_vm9, %v510_v24, 0.0  ;;  %v545_v54 = vsel %vm444_vm9, %v509_v51, 0.0  ;;  %s824_s30 = sshll.u32 %s1039_s4, 4  ;;  %s825_s30 = int_to_ptr.vmem [resolvable:$true] %s824_s30 }
 0x114   :  { %v512_v55 = vmul.f32 %v498_v53, %v417_v31  ;;  %v511_v56 = vmul.f32 %v498_v53, %v416_v42  ;;  %v514_v59 = vmul.f32 %v498_v53, %v419_v36  ;;  %v513_v62 = vmul.f32 %v498_v53, %v418_v5  ;;  %s1009_s2 = scalar_lea.vmem %s825_s30, 4096  ;;  %p1014_p9 = scmp.lt.s32.totalorder %s825_s30, %s825_s30 }
 0x115   :  { %p1010_p8 = scmp.ne.s32.totalorder %s825_s30, %s1009_s2  ;;  %p1015_p10 = scmp.lt.s32.totalorder %s1009_s2, %s1009_s2 }
 0x116   :  { %525 = vadd.xlane.f32.xlu1 %v524_v28  ;;  %522 = vadd.xlane.f32.xlu0 %v521_v35  ;;  %v554_v60 = vsel %vm444_vm9, %v512_v55, 0.0  ;;  %v551_v15 = vsel %vm444_vm9, %v511_v56, 0.0  ;;  %v560_v1 = vsel %vm444_vm9, %v514_v59, 0.0  ;;  %v557_v30 = vsel %vm444_vm9, %v513_v62, 0.0 }
 0x117   :  { %p1016_p11 = por %p1015_p10, %p1014_p9 }
 0x119   :  { %p1017_p12 = pnand %p1016_p11, %p1010_p8 }
 0x11a   :  { %531 = vadd.xlane.f32.xlu1 %v530_v9  ;;  %528 = vadd.xlane.f32.xlu0 %v527_v43 }
 0x11e   :  { %537 = vadd.xlane.f32.xlu1 %v536_v32  ;;  %534 = vadd.xlane.f32.xlu0 %v533_v48 }
 0x122   :  { %543 = vadd.xlane.f32.xlu1 %v542_v50  ;;  %540 = vadd.xlane.f32.xlu0 %v539_v11 }
 0x126   :  { %549 = vadd.xlane.f32.xlu1 %v548_v40  ;;  %546 = vadd.xlane.f32.xlu0 %v545_v54 }
 0x12a   :  { %555 = vadd.xlane.f32.xlu1 %v554_v60  ;;  %552 = vadd.xlane.f32.xlu0 %v551_v15 }
 0x12e   :  { %561 = vadd.xlane.f32.xlu1 %v560_v1  ;;  %558 = vadd.xlane.f32.xlu0 %v557_v30 }
 0x19f   :  { %v520_v58 = vpop.xlane.xlu1 %519  ;;  %v517_v14 = vpop.xlane.xlu0 %516 }
 0x1a0   :  { %v564_v61 = vadd.f32 %v520_v58, %v421_v2  ;;  %v563_v0 = vadd.f32 %v517_v14, %v420_v25 }
 0x1a2   :  { %v837_v3 = vmul.f32 -1.442695, %v564_v61  ;;  %v836_v6 = vmul.f32 -1.442695, %v563_v0 }
 0x1a3   :  { %v526_v7 = vpop.xlane.xlu1 %525  ;;  %v523_v8 = vpop.xlane.xlu0 %522 }
 0x1a4   :  { %891 = vpow2.f32 %v837_v3  ;;  %v566_v29 = vadd.f32 %v526_v7, %v423_v4  ;;  %v565_v47 = vadd.f32 %v523_v8, %v422_v57 }
 0x1a5   :  { %893 = vpow2.f32 %v836_v6 }
 0x1a6   :  { %v839_v45 = vmul.f32 -1.442695, %v566_v29  ;;  %v838_v12 = vmul.f32 -1.442695, %v565_v47 }
 0x1a7   :  { %v532_v16 = vpop.xlane.xlu1 %531  ;;  %v529_v17 = vpop.xlane.xlu0 %528 }
 0x1a8   :  { %895 = vpow2.f32 %v839_v45  ;;  %v568_v39 = vadd.f32 %v532_v16, %v425_v63  ;;  %v567_v18 = vadd.f32 %v529_v17, %v424_v10 }
 0x1a9   :  { %897 = vpow2.f32 %v838_v12 }
 0x1aa   :  { %v841_v19 = vmul.f32 -1.442695, %v568_v39  ;;  %v840_v20 = vmul.f32 -1.442695, %v567_v18 }
 0x1ab   :  { %v538_v22 = vpop.xlane.xlu1 %537  ;;  %v535_v23 = vpop.xlane.xlu0 %534 }
 0x1ac   :  { %899 = vpow2.f32 %v840_v20  ;;  %v569_v38 = vadd.f32 %v535_v23, %v1433_v41  ;;  %v570_v33 = vadd.f32 %v538_v22, %v427_v37 }
 0x1ad   :  { %901 = vpow2.f32 %v841_v19 }
 0x1ae   :  { %v892_v26 = vpop.eup %891  ;;  %v842_v21 = vmul.f32 -1.442695, %v569_v38  ;;  %v843_v32 = vmul.f32 -1.442695, %v570_v33 }
 0x1af   :  { %v894_v27 = vpop.eup %893  ;;  %v628_v31 = vadd.f32 1.0, %v892_v26  ;;  %v544_v42 = vpop.xlane.xlu1 %543 }
 0x1b0   :  { %v541_v34 = vpop.xlane.xlu0 %540  ;;  %v627_v28 = vadd.f32 1.0, %v894_v27  ;;  %v572_v35 = vadd.f32 %v544_v42, %v421_v2 }
 0x1b1   :  { %903 = vrcp.f32 %v628_v31  ;;  %v571_v48 = vadd.f32 %v541_v34, %v420_v25 }
 0x1b2   :  { %v896_v36 = vpop.eup %895  ;;  %905 = vrcp.f32 %v627_v28  ;;  %v845_v5 = vmul.f32 -1.442695, %v572_v35 }
 0x1b3   :  { %v898_v53 = vpop.eup %897  ;;  %v550_v9 = vpop.xlane.xlu1 %549  ;;  %v630_v13 = vadd.f32 1.0, %v896_v36  ;;  %v844_v55 = vmul.f32 -1.442695, %v571_v48  ;;  %v957_v48 = vld [vmem:[#allocation2] sm:$0xff] }
 0x1b4   :  { %v547_v43 = vpop.xlane.xlu0 %546  ;;  %v629_v52 = vadd.f32 1.0, %v898_v53  ;;  %907 = vpow2.f32 %v845_v5  ;;  %v574_v44 = vadd.f32 %v550_v9, %v423_v4  ;;  %v955_v9 = vld [vmem:[#allocation2 + $0x10] sm:$0xff] }
 0x1b5   :  { %909 = vpow2.f32 %v842_v21  ;;  %v573_v40 = vadd.f32 %v547_v43, %v422_v57 }
 0x1b6   :  { %911 = vrcp.f32 %v629_v52  ;;  %v847_v49 = vmul.f32 -1.442695, %v574_v44  ;;  %v900_v50 = vpop.eup %899  ;;  %v956_v52 = vld [vmem:[#allocation2 + $0x18] sm:$0xff] }
 0x1b7   :  { %v556_v11 = vpop.xlane.xlu1 %555  ;;  %v902_v51 = vpop.eup %901  ;;  %v631_v56 = vadd.f32 1.0, %v900_v50  ;;  %v846_v30 = vmul.f32 -1.442695, %v573_v40  ;;  %v960_v40 = vld [vmem:[#allocation2 + $0x28] sm:$0xff] }
 0x1b8   :  { %v553_v24 = vpop.xlane.xlu0 %552  ;;  %913 = vpow2.f32 %v847_v49  ;;  %v576_v54 = vadd.f32 %v556_v11, %v425_v63  ;;  %v632_v59 = vadd.f32 1.0, %v902_v51  ;;  %v958_v49 = vld [vmem:[#allocation2 + $0x8] sm:$0xff] }
 0x1b9   :  { %915 = vpow2.f32 %v843_v32  ;;  %v575_v46 = vadd.f32 %v553_v24, %v424_v10  ;;  %v959_v24 = vld [vmem:[#allocation2 + $0x20] sm:$0xff] }
 0x1ba   :  { %917 = vrcp.f32 %v630_v13  ;;  %v849_v60 = vmul.f32 -1.442695, %v576_v54 }
 0x1bb   :  { %v904_v15 = vpop.eup %903  ;;  %v562_v62 = vpop.xlane.xlu1 %561  ;;  %v848_v57 = vmul.f32 -1.442695, %v575_v46  ;;  %v964_v46 = vld [vmem:[#allocation2 + $0x48] sm:$0xff] }
 0x1bc   :  { %v906_v1 = vpop.eup %905  ;;  %919 = vpow2.f32 %v849_v60  ;;  %v578_v2 = vadd.f32 %v562_v62, %v427_v37  ;;  %682 = vperm.xlu1 %858, %v904_v15   ;;  %v559_v25 = vpop.xlane.xlu0 %558  ;;  %v962_v15 = vld [vmem:[#allocation2 + $0x38] sm:$0xff] }
 0x1bd   :  { %921 = vpow2.f32 %v844_v55  ;;  %677 = vperm.xlu0 %857, %v906_v1   ;;  %v577_v3 = vadd.f32 %v559_v25, %v1433_v41  ;;  %v963_v1 = vld [vmem:[#allocation2 + $0x40] sm:$0xff] }
 0x1be   :  { %v908_v58 = vpop.eup %907  ;;  %923 = vrcp.f32 %v631_v56  ;;  %v851_v14 = vmul.f32 -1.442695, %v578_v2  ;;  %v961_v56 = vld [vmem:[#allocation2 + $0x30] sm:$0xff] }
 0x1bf   :  { %v910_v61 = vpop.eup %909  ;;  %925 = vrcp.f32 %v632_v59  ;;  %v636_v0 = vadd.f32 1.0, %v908_v58  ;;  %v850_v63 = vmul.f32 -1.442695, %v577_v3 }
 0x1c0   :  { %v912_v4 = vpop.eup %911  ;;  %927 = vpow2.f32 %v846_v30  ;;  %v633_v7 = vadd.f32 1.0, %v910_v61 }
 0x1c1   :  { %929 = vrcp.f32 %v636_v0  ;;  %687 = vperm.xlu1 %858, %v912_v4   ;;  %v966_v0 = vld [vmem:[#allocation2 + $0x98] sm:$0xff] }
 0x1c2   :  { %v914_v6 = vpop.eup %913  ;;  %931 = vpow2.f32 %v851_v14  ;;  %v965_v14 = vld [vmem:[#allocation2 + $0x90] sm:$0xff] }
 0x1c3   :  { %v916_v8 = vpop.eup %915  ;;  %v638_v29 = vadd.f32 1.0, %v914_v6  ;;  %933 = vpow2.f32 %v848_v57  ;;  %v967_v57 = vld [vmem:[#allocation2 + $0x50] sm:$0xff]  ;;  %v968_v6 = vld [vmem:[#allocation2 + $0x58] sm:$0xff] }
 0x1c4   :  { %v918_v47 = vpop.eup %917  ;;  %v634_v45 = vadd.f32 1.0, %v916_v8 }
 0x1c5   :  { %935 = vrcp.f32 %v638_v29  ;;  %692 = vperm.xlu1 %858, %v918_v47   ;;  %v969_v47 = vld [vmem:[#allocation2 + $0xb0] sm:$0xff] }
 0x1c6   :  { %v920_v10 = vpop.eup %919  ;;  %937 = vrcp.f32 %v633_v7 }
 0x1c7   :  { %v922_v12 = vpop.eup %921  ;;  %v640_v16 = vadd.f32 1.0, %v920_v10  ;;  %939 = vpow2.f32 %v850_v63  ;;  %v970_v10 = vld [vmem:[#allocation2 + $0xb8] sm:$0xff] }
 0x1c8   :  { %v924_v17 = vpop.eup %923  ;;  %v635_v19 = vadd.f32 1.0, %v922_v12  ;;  %v971_v12 = vld [vmem:[#allocation2 + $0x60] sm:$0xff] }
 0x1c9   :  { %v926_v39 = vpop.eup %925  ;;  %941 = vrcp.f32 %v640_v16  ;;  %697 = vperm.xlu1 %858, %v924_v17   ;;  %v972_v17 = vld [vmem:[#allocation2 + $0x68] sm:$0xff] }
 0x1ca   :  { %v928_v18 = vpop.eup %927  ;;  %943 = vrcp.f32 %v634_v45 }
 0x1cb   :  { %v930_v20 = vpop.eup %929  ;;  %945 = vrcp.f32 %v635_v19  ;;  %v637_v38 = vadd.f32 1.0, %v928_v18 }
 0x1cc   :  { %v932_v41 = vpop.eup %931  ;;  %722 = vperm.xlu0 %857, %v930_v20   ;;  %v973_v20 = vld [vmem:[#allocation2 + $0xd0] sm:$0xff] }
 0x1cd   :  { %v642_v22 = vadd.f32 1.0, %v932_v41  ;;  %702 = vperm.xlu1 %858, %v926_v39   ;;  %v934_v23 = vpop.eup %933 }
 0x1ce   :  { %v639_v31 = vadd.f32 1.0, %v934_v23 }
 0x1cf   :  { %v936_v26 = vpop.eup %935  ;;  %947 = vrcp.f32 %v642_v22  ;;  %v974_v22 = vld [vmem:[#allocation2 + $0xd8] sm:$0xff] }
 0x1d0   :  { %v938_v37 = vpop.eup %937  ;;  %732 = vperm.xlu0 %857, %v936_v26   ;;  %949 = vrcp.f32 %v637_v38  ;;  %v975_v38 = vld [vmem:[#allocation2 + $0x70] sm:$0xff] }
 0x1d1   :  { %707 = vperm.xlu1 %858, %v938_v37   ;;  %v940_v27 = vpop.eup %939  ;;  %951 = vrcp.f32 %v639_v31  ;;  %v976_v37 = vld [vmem:[#allocation2 + $0x78] sm:$0xff] }
 0x1d2   :  { %v641_v28 = vadd.f32 1.0, %v940_v27 }
 0x1d3   :  { %v942_v42 = vpop.eup %941 }
 0x1d4   :  { %v944_v34 = vpop.eup %943  ;;  %742 = vperm.xlu0 %857, %v942_v42   ;;  %953 = vrcp.f32 %v641_v28  ;;  %v977_v42 = vld [vmem:[#allocation2 + $0x80] sm:$0xff]  ;;  %v978_v28 = vld [vmem:[#allocation2 + $0x88] sm:$0xff] }
 0x1d5   :  { %712 = vperm.xlu1 %858, %v944_v34   ;;  %v946_v35 = vpop.eup %945 }
 0x1d9   :  { %v948_v33 = vpop.eup %947  ;;  %717 = vperm.xlu1 %858, %v946_v35  }
 0x1da   :  { %752 = vperm.xlu0 %857, %v948_v33   ;;  %v950_v21 = vpop.eup %949 }
 0x1db   :  { %v952_v36 = vpop.eup %951 }
 0x1dd   :  { %727 = vperm.xlu1 %858, %v950_v21   ;;  %v979_v21 = vld [vmem:[#allocation2 + $0xf0] sm:$0xff] }
 0x1de   :  { %v954_v5 = vpop.eup %953 }
 0x1e1   :  { %737 = vperm.xlu1 %858, %v952_v36  }
 0x1e5   :  { %747 = vperm.xlu1 %858, %v954_v5   ;;  %v980_v5 = vld [vmem:[#allocation2 + $0xf8] sm:$0xff] }
 0x23b   :  { %v683_v53 = vpop.permute.xlu1 %682 }
 0x23c   :  { %v757_v43 = vmul.f32 %v955_v9, %v683_v53  ;;  %v758_v44 = vmul.f32 %v956_v52, %v683_v53  ;;  %v678_v32 = vpop.permute.xlu0 %677 }
 0x23d   :  { %v755_v13 = vmul.f32 %v957_v48, %v678_v32  ;;  %v756_v50 = vmul.f32 %v958_v49, %v678_v32 }
 0x23e   :  { %789 = vst [vmem:[#allocation5 + $0x10] sm:$0xff] %v757_v43  ;;  %790 = vst [vmem:[#allocation5 + $0x18] sm:$0xff] %v758_v44  ;;  %v981_v43 = vld [vmem:[#allocation2 + $0xa0] sm:$0xff]  ;;  %v982_v44 = vld [vmem:[#allocation2 + $0xa8] sm:$0xff] }
 0x23f   :  { %787 = vst [vmem:[#allocation5] sm:$0xff] %v755_v13  ;;  %788 = vst [vmem:[#allocation5 + $0x8] sm:$0xff] %v756_v50  ;;  %v983_v13 = vld [vmem:[#allocation2 + $0xc0] sm:$0xff]  ;;  %v984_v50 = vld [vmem:[#allocation2 + $0xc8] sm:$0xff] }
 0x240   :  { %v688_v11 = vpop.permute.xlu1 %687 }
 0x241   :  { %v759_v51 = vmul.f32 %v959_v24, %v688_v11  ;;  %v760_v54 = vmul.f32 %v960_v40, %v688_v11 }
 0x243   :  { %791 = vst [vmem:[#allocation5 + $0x20] sm:$0xff] %v759_v51  ;;  %792 = vst [vmem:[#allocation5 + $0x28] sm:$0xff] %v760_v54  ;;  %v985_v51 = vld [vmem:[#allocation2 + $0xe0] sm:$0xff]  ;;  %v986_v54 = vld [vmem:[#allocation2 + $0xe8] sm:$0xff] }
 0x244   :  { %v693_v55 = vpop.permute.xlu1 %692 }
 0x245   :  { %v761_v60 = vmul.f32 %v961_v56, %v693_v55  ;;  %v762_v59 = vmul.f32 %v962_v15, %v693_v55 }
 0x247   :  { %793 = vst [vmem:[#allocation5 + $0x30] sm:$0xff] %v761_v60  ;;  %794 = vst [vmem:[#allocation5 + $0x38] sm:$0xff] %v762_v59 }
 0x248   :  { %v698_v62 = vpop.permute.xlu1 %697 }
 0x249   :  { %v763_v30 = vmul.f32 %v963_v1, %v698_v62  ;;  %v764_v2 = vmul.f32 %v964_v46, %v698_v62 }
 0x24b   :  { %795 = vst [vmem:[#allocation5 + $0x40] sm:$0xff] %v763_v30  ;;  %796 = vst [vmem:[#allocation5 + $0x48] sm:$0xff] %v764_v2  ;;  %v723_v25 = vpop.permute.xlu0 %722 }
 0x24c   :  { %v703_v58 = vpop.permute.xlu1 %702  ;;  %v773_v61 = vmul.f32 %v965_v14, %v723_v25  ;;  %v774_v4 = vmul.f32 %v966_v0, %v723_v25 }
 0x24d   :  { %v765_v3 = vmul.f32 %v967_v57, %v703_v58  ;;  %v766_v7 = vmul.f32 %v968_v6, %v703_v58 }
 0x24e   :  { %805 = vst [vmem:[#allocation5 + $0x90] sm:$0xff] %v773_v61  ;;  %806 = vst [vmem:[#allocation5 + $0x98] sm:$0xff] %v774_v4 }
 0x24f   :  { %797 = vst [vmem:[#allocation5 + $0x50] sm:$0xff] %v765_v3  ;;  %798 = vst [vmem:[#allocation5 + $0x58] sm:$0xff] %v766_v7  ;;  %v733_v8 = vpop.permute.xlu0 %732 }
 0x250   :  { %v708_v29 = vpop.permute.xlu1 %707  ;;  %v777_v63 = vmul.f32 %v969_v47, %v733_v8  ;;  %v778_v45 = vmul.f32 %v970_v10, %v733_v8 }
 0x251   :  { %v767_v16 = vmul.f32 %v971_v12, %v708_v29  ;;  %v768_v39 = vmul.f32 %v972_v17, %v708_v29 }
 0x252   :  { %809 = vst [vmem:[#allocation5 + $0xb0] sm:$0xff] %v777_v63  ;;  %810 = vst [vmem:[#allocation5 + $0xb8] sm:$0xff] %v778_v45 }
 0x253   :  { %799 = vst [vmem:[#allocation5 + $0x60] sm:$0xff] %v767_v16  ;;  %800 = vst [vmem:[#allocation5 + $0x68] sm:$0xff] %v768_v39  ;;  %v743_v18 = vpop.permute.xlu0 %742 }
 0x254   :  { %v713_v19 = vpop.permute.xlu1 %712  ;;  %v781_v41 = vmul.f32 %v973_v20, %v743_v18  ;;  %v782_v23 = vmul.f32 %v974_v22, %v743_v18 }
 0x255   :  { %v769_v26 = vmul.f32 %v975_v38, %v713_v19  ;;  %v770_v27 = vmul.f32 %v976_v37, %v713_v19 }
 0x256   :  { %813 = vst [vmem:[#allocation5 + $0xd0] sm:$0xff] %v781_v41  ;;  %814 = vst [vmem:[#allocation5 + $0xd8] sm:$0xff] %v782_v23 }
 0x257   :  { %801 = vst [vmem:[#allocation5 + $0x70] sm:$0xff] %v769_v26  ;;  %802 = vst [vmem:[#allocation5 + $0x78] sm:$0xff] %v770_v27 }
 0x258   :  { %v718_v31 = vpop.permute.xlu1 %717 }
 0x259   :  { %v771_v34 = vmul.f32 %v977_v42, %v718_v31  ;;  %v772_v35 = vmul.f32 %v978_v28, %v718_v31  ;;  %v753_v33 = vpop.permute.xlu0 %752 }
 0x25a   :  { %v785_v36 = vmul.f32 %v979_v21, %v753_v33  ;;  %v786_v53 = vmul.f32 %v980_v5, %v753_v33 }
 0x25b   :  { %803 = vst [vmem:[#allocation5 + $0x80] sm:$0xff] %v771_v34  ;;  %804 = vst [vmem:[#allocation5 + $0x88] sm:$0xff] %v772_v35 }
 0x25c   :  { %817 = vst [vmem:[#allocation5 + $0xf0] sm:$0xff] %v785_v36  ;;  %818 = vst [vmem:[#allocation5 + $0xf8] sm:$0xff] %v786_v53  ;;  %v728_v9 = vpop.permute.xlu1 %727 }
 0x25d   :  { %v775_v52 = vmul.f32 %v981_v43, %v728_v9  ;;  %v776_v32 = vmul.f32 %v982_v44, %v728_v9 }
 0x25f   :  { %807 = vst [vmem:[#allocation5 + $0xa0] sm:$0xff] %v775_v52  ;;  %808 = vst [vmem:[#allocation5 + $0xa8] sm:$0xff] %v776_v32 }
 0x260   :  { %v738_v48 = vpop.permute.xlu1 %737 }
 0x261   :  { %v779_v49 = vmul.f32 %v983_v13, %v738_v48  ;;  %v780_v11 = vmul.f32 %v984_v50, %v738_v48 }
 0x263   :  { %811 = vst [vmem:[#allocation5 + $0xc0] sm:$0xff] %v779_v49  ;;  %812 = vst [vmem:[#allocation5 + $0xc8] sm:$0xff] %v780_v11 }
 0x264   :  { %v748_v24 = vpop.permute.xlu1 %747 }
 0x265   :  { %v783_v40 = vmul.f32 %v985_v51, %v748_v24  ;;  %v784_v55 = vmul.f32 %v986_v54, %v748_v24 }
 0x267   :  { %815 = vst [vmem:[#allocation5 + $0xe0] sm:$0xff] %v783_v40  ;;  %816 = vst [vmem:[#allocation5 + $0xe8] sm:$0xff] %v784_v55 }
 0x268   :  { %1020 = shalt.err (!%p1017_p12)
}
 0x269   :  { %s1021_s7 = scalar_lea.hbm %s1460_s5, 4096 }
 0x26a   :  { %p1022_p13 = scmp.ne.s32.totalorder %s1460_s5, %s1021_s7  ;;  %p1025_p0 = scmp.lt.u32.totalorder %s1021_s7, %s1460_s5 }
 0x26c   :  { %p1027_p1 = pnand %p1025_p0, %p1022_p13 }
 0x26e   :  { %1030 = shalt.err (!%p1027_p1)
}
 0x26f   :  { %830 = dma.vmem_to_hbm [thread:$0]  %s825_s30, 4096, %s1460_s5, [#allocation4], %s1036_s28, %s1036_s28, %s1037_s29  }
 0x270   :  { %1033 = dma.done.wait [#allocation4], 4096  }
 0x271   :  { %1034 = vsyncadd [#allocation4], 4294963200 }
 0x272   :  { %834 = vsyncpa [#allocation3], 1 }
 0x273   :  { %835 = vsyncpa [#allocation4], 1 }

</bundles_post_ra>
